<compile_context>
chip_gen: v6e
topology: v6e:2x2x1
jax: 0.10.0
libtpu: 0.0.40
codegen_flags: <defaults>
</compile_context>

<pallas_src>
import functools

import numpy as np

import jax
import jax.numpy as jnp
from jax import lax
from jax.experimental import pallas as pl
from jax.experimental.pallas import tpu as pltpu

REL_THR = 0.7
REP_THR = 0.7

_LANE = 128      # vreg lane width
_SUBLANE = 8     # f32 sublane height


# ----------------------------------------------------------------------------
# Small helpers (host side).
# ----------------------------------------------------------------------------
def _round_up(x, m):
    return (x + m - 1) // m * m


def _largest_mult_divisor(total, cap, q):
    """Largest multiple of q that divides `total` and is <= cap (0 if none)."""
    t = min(total, cap) // q * q
    while t >= q:
        if total % t == 0:
            return t
        t -= q
    return 0


def _tpu_vmem_bytes():
    try:
        return int(pltpu.get_tpu_info().vmem_capacity_bytes)
    except Exception:  # CPU interpret / older jax / attribute rename
        return None


def _pick_target_block_bytes(vmem_bytes):
    # v5e/v6e (128 MiB VMEM, HBM-bound): big blocks amortize the ~0.35us/step
    # overhead.  v7x (64 MiB VMEM, VALU-bound here, 2 TCs): modest blocks,
    # keep VMEM headroom, rely on G>=2 for megacore sharding.
    if vmem_bytes is None:
        return 4 << 20
    if vmem_bytes <= (96 << 20):
        return 2 << 20
    return 6 << 20


def _vmem_limit_bytes(block_f32_bytes, vmem_bytes):
    # 2 f32 inputs x 2 pipeline buffers + double-buffered int8 output
    # + ~6 block-sized in-kernel f32 temporaries + slack.
    need = (4 * block_f32_bytes + 2 * (block_f32_bytes // 4)
            + 6 * block_f32_bytes + (2 << 20))
    hard_cap = (vmem_bytes - (16 << 20)) if vmem_bytes else (48 << 20)
    return int(min(max(need, 32 << 20), max(hard_cap, 32 << 20)))


def _choose_flat_tile(p, n_pad, target_bytes):
    """T planes per block: multiple of 8 (f32 sublane), ideally 32 (packed int8
    stores); grid kept >= 2 steps when the plane count permits (v7x megacore)."""
    pp = _round_up(p, _SUBLANE)
    cap = max(_SUBLANE, target_bytes // (4 * n_pad))
    t = (_largest_mult_divisor(pp, cap, 32)
         or _largest_mult_divisor(pp, cap, _SUBLANE)
         or _SUBLANE)
    if pp // t == 1 and pp >= 2 * _SUBLANE:
        t2 = (_largest_mult_divisor(pp, pp // 2, 32)
              or _largest_mult_divisor(pp, pp // 2, _SUBLANE))
        if t2:
            t = t2
    return pp, t


def _choose_plane_tile(p, plane_bytes, target_bytes):
    cap = max(1, target_bytes // plane_bytes)
    t = _largest_mult_divisor(p, cap, 1) or 1
    if p // t == 1 and p >= 2:
        t2 = _largest_mult_divisor(p, max(1, p // 2), 1)
        if t2:
            t = t2
    return t


def _edge_bias(h, w, n_pad):
    """(8, n_pad) f32 rows of 0 / -inf; rows 0..3 = up/down/left/right edge bias."""
    n = h * w
    lane = np.arange(n_pad)
    col = lane % w
    real = lane < n
    b = np.zeros((8, n_pad), np.float32)
    neg = np.float32(-np.inf)
    b[0, lane < w] = neg                   # row 0    -> up neighbour is border
    b[1, (lane >= n - w) & real] = neg     # row H-1  -> down neighbour is border
    b[2, (col == 0) & real] = neg          # col 0    -> left neighbour is border
    b[3, (col == w - 1) & real] = neg      # col W-1  -> right neighbour is border
    return jnp.asarray(b)


# ----------------------------------------------------------------------------
# Kernels.
# ----------------------------------------------------------------------------
def _nms_flat_kernel(bias_ref, rel_ref, rep_ref, mask_ref, *, width, n_lanes):
    """One (T, Np) slab of flattened planes (plane pixels on the lane axis)."""
    rep = rep_ref[...]                    # (T, Np) f32
    rel = rel_ref[...]
    b = bias_ref[...]                     # (8, Np) f32: rows 0..3 are 0 / -inf

    # Vertical pass: neighbours live +/-W lanes away inside each flattened
    # plane.  The additive 0/-inf bias rows reproduce MaxPool2d's implicit
    # -inf border and kill the roll wrap-around with one VPU add each
    # (no per-element iota / `% W`).  Rolls use the XLU slot, in-register.
    v = rep
    v = jnp.maximum(v, pltpu.roll(rep, width % n_lanes, 1) + b[0:1, :])              # (h-1, w)
    v = jnp.maximum(v, pltpu.roll(rep, (n_lanes - width) % n_lanes, 1) + b[1:2, :])  # (h+1, w)
    # Horizontal pass on the vertical running max.
    pooled = v
    pooled = jnp.maximum(pooled, pltpu.roll(v, 1, 1) + b[2:3, :])                    # (h, w-1)
    pooled = jnp.maximum(pooled, pltpu.roll(v, n_lanes - 1, 1) + b[3:4, :])          # (h, w+1)

    maxima = (rep == pooled) & (rep >= REP_THR) & (rel >= REL_THR)
    mask_ref[...] = maxima.astype(jnp.int8)


def _nms_plane_kernel(rel_ref, rep_ref, mask_ref):
    """One (T, Hp, Wp) slab of whole (padded) planes; padding holds -inf in rep."""
    rep = rep_ref[...]                    # (T, Hp, Wp) f32
    rel = rel_ref[...]
    hp, wp = rep.shape[1], rep.shape[2]
    neg_inf = jnp.float32(-jnp.inf)
    row = lax.broadcasted_iota(jnp.int32, rep.shape, 1)
    col = lax.broadcasted_iota(jnp.int32, rep.shape, 2)

    v = rep
    v = jnp.maximum(v, jnp.where(row == 0, neg_inf, pltpu.roll(rep, 1, 1)))
    v = jnp.maximum(v, jnp.where(row == hp - 1, neg_inf, pltpu.roll(rep, hp - 1, 1)))
    pooled = v
    pooled = jnp.maximum(pooled, jnp.where(col == 0, neg_inf, pltpu.roll(v, 1, 2)))
    pooled = jnp.maximum(pooled, jnp.where(col == wp - 1, neg_inf, pltpu.roll(v, wp - 1, 2)))

    maxima = (rep == pooled) & (rep >= REP_THR) & (rel >= REL_THR)
    mask_ref[...] = maxima.astype(jnp.int8)


# ----------------------------------------------------------------------------
# Wrapper.
# ----------------------------------------------------------------------------
def nms_mask(reliability, repeatability, *, layout=None):
    """(B, C, H, W) float32 pair -> int8 NMS mask of shape (B, C, H, W)."""
    assert reliability.shape == repeatability.shape
    b, c, h, w = repeatability.shape
    p, n = b * c, h * w
    vmem_bytes = _tpu_vmem_bytes()
    target = _pick_target_block_bytes(vmem_bytes)

    if layout is None:
        # Flat (plane-on-lanes) layout while a T=8 slab of flattened planes
        # still fits the target block; whole-2-D-plane blocks otherwise.
        layout = "flat" if _SUBLANE * _round_up(n, _LANE) * 4 <= target else "plane"

    if layout == "flat":
        n_pad = _round_up(n, _LANE)       # lane-dense (unmasked) output stores
        pp, t = _choose_flat_tile(p, n_pad, target)
        g = pp // t

        rep2 = repeatability.reshape(p, n)
        rel2 = reliability.reshape(p, n)
        if (pp, n_pad) != (p, n):
            # -inf keeps padded cells below REP_THR (mask == 0 there); padded
            # lanes/planes never feed a real pixel's neighbourhood (edge bias).
            rep2 = jnp.pad(rep2, ((0, pp - p), (0, n_pad - n)),
                           constant_values=float("-inf"))
            rel2 = jnp.pad(rel2, ((0, pp - p), (0, n_pad - n)))
        bias = _edge_bias(h, w, n_pad)

        blk = t * n_pad * 4
        plane_spec = pl.BlockSpec((t, n_pad), lambda gi: (gi, 0))
        mask = pl.pallas_call(
            functools.partial(_nms_flat_kernel, width=w, n_lanes=n_pad),
            out_shape=jax.ShapeDtypeStruct((pp, n_pad), jnp.int8),
            grid_spec=pltpu.PrefetchScalarGridSpec(
                num_scalar_prefetch=0,
                grid=(g,),
                in_specs=[
                    pl.BlockSpec((8, n_pad), lambda gi: (0, 0)),  # constant block
                    plane_spec,
                    plane_spec,
                ],
                out_specs=plane_spec,
            ),
            compiler_params=pltpu.CompilerParams(
                dimension_semantics=("parallel",),
                vmem_limit_bytes=_vmem_limit_bytes(blk, vmem_bytes),
            ),
            cost_estimate=pl.CostEstimate(
                flops=16 * pp * n_pad,
                transcendentals=0,
                bytes_accessed=9 * pp * n_pad + 32 * n_pad,
            ),
        )(bias, rel2, rep2)
        return mask[:p, :n].reshape(b, c, h, w)

    # "plane" layout: whole (padded) 2-D planes per block.
    # TODO(synk): for planes whose padded f32 footprint alone exceeds the VMEM
    # budget, split along H with a 1-row halo instead of whole-plane blocks.
    h_pad = _round_up(h, _SUBLANE)
    w_pad = _round_up(w, _LANE)
    rep3 = repeatability.reshape(p, h, w)
    rel3 = reliability.reshape(p, h, w)
    if (h_pad, w_pad) != (h, w):
        rep3 = jnp.pad(rep3, ((0, 0), (0, h_pad - h), (0, w_pad - w)),
                       constant_values=float("-inf"))
        rel3 = jnp.pad(rel3, ((0, 0), (0, h_pad - h), (0, w_pad - w)))

    plane_bytes = h_pad * w_pad * 4
    t = _choose_plane_tile(p, plane_bytes, target)
    g = p // t
    spec = pl.BlockSpec((t, h_pad, w_pad), lambda gi: (gi, 0, 0))
    mask = pl.pallas_call(
        _nms_plane_kernel,
        out_shape=jax.ShapeDtypeStruct((p, h_pad, w_pad), jnp.int8),
        grid_spec=pltpu.PrefetchScalarGridSpec(
            num_scalar_prefetch=0,
            grid=(g,),
            in_specs=[spec, spec],
            out_specs=spec,
        ),
        compiler_params=pltpu.CompilerParams(
            dimension_semantics=("parallel",),
            vmem_limit_bytes=_vmem_limit_bytes(t * plane_bytes, vmem_bytes),
        ),
        cost_estimate=pl.CostEstimate(
            flops=24 * p * h_pad * w_pad,
            transcendentals=0,
            bytes_accessed=9 * p * h_pad * w_pad,
        ),
    )(rel3, rep3)
    return mask[:, :h, :w].reshape(b, c, h, w)


def non_max_suppression(reliability_list, repeatability_list):
    """Mirrors NonMaxSuppression.forward: returns a (2, K) array of (h, w) coords."""
    assert len(reliability_list) == len(repeatability_list) == 1
    reliability, repeatability = reliability_list[0], repeatability_list[0]

    mask = nms_mask(reliability, repeatability)

    # TODO(synk): torch's .nonzero() has a data-dependent output shape; there is
    # no static-shape Pallas equivalent, so coordinate extraction stays in eager
    # JAX (pass size=/fill_value to jnp.nonzero if this must run under jit).
    idx = jnp.nonzero(mask)                      # row-major, matches torch.nonzero
    return jnp.stack([idx[2], idx[3]], axis=0)   # rows 2:4 of nonzero().t()


if __name__ == "__main__":
    key = jax.random.PRNGKey(0)
    k1, k2 = jax.random.split(key)

    B, C, H, W = 2, 4, 16, 16
    reliability = jax.random.uniform(k1, (B, C, H, W), dtype=jnp.float32)
    repeatability = jax.random.uniform(k2, (B, C, H, W), dtype=jnp.float32)

    coords = non_max_suppression([reliability], [repeatability])
    jax.block_until_ready(coords)

    def ref_mask(rel, rep):
        pooled = lax.reduce_window(
            rep, -jnp.inf, lax.max,
            window_dimensions=(1, 1, 3, 3), window_strides=(1, 1, 1, 1),
            padding=((0, 0), (0, 0), (1, 1), (1, 1)))
        return (rep == pooled) & (rep >= REP_THR) & (rel >= REL_THR)

    ref = ref_mask(reliability, repeatability)
    got = nms_mask(reliability, repeatability).astype(bool)
    assert bool(jnp.all(ref == got)), "flat-layout mask mismatch vs reference"

    ref_idx = jnp.nonzero(ref)
    ref_coords = jnp.stack([ref_idx[2], ref_idx[3]], axis=0)
    assert coords.shape == ref_coords.shape and bool(jnp.all(coords == ref_coords)), \
        "coords mismatch vs reference"

    # Exercise the padding paths (P % 8 != 0, H*W % 128 != 0, W % 128 != 0)
    # and the whole-plane layout at a second small shape.
    B2, C2, H2, W2 = 1, 3, 20, 200
    r_rel = jax.random.uniform(jax.random.PRNGKey(1), (B2, C2, H2, W2), dtype=jnp.float32)
    r_rep = jax.random.uniform(jax.random.PRNGKey(2), (B2, C2, H2, W2), dtype=jnp.float32)
    ref2 = ref_mask(r_rel, r_rep)
    got_flat = nms_mask(r_rel, r_rep, layout="flat").astype(bool)
    assert bool(jnp.all(ref2 == got_flat)), "flat-layout (padded) mask mismatch"
    got_plane = nms_mask(r_rel, r_rep, layout="plane").astype(bool)
    assert bool(jnp.all(ref2 == got_plane)), "plane-layout mask mismatch"

    print("KERNEL_OK")
</pallas_src>

<mosaic_0001>
module attributes {stable_mosaic.version = 11 : i64} {
  func.func @_nms_flat_kernel(%arg0: i32, %arg1: memref<8x256xf32, #tpu.memory_space<vmem>>, %arg2: memref<8x256xf32, #tpu.memory_space<vmem>>, %arg3: memref<8x256xf32, #tpu.memory_space<vmem>>, %arg4: memref<8x256xi8, #tpu.memory_space<vmem>>) attributes {dimension_semantics = [#tpu.dimension_semantics<parallel>], iteration_bounds = array<i64: 1>, scalar_prefetch = 0 : i64, scratch_operands = 0 : i64, tpu.core_type = #tpu.core_type<tc>, window_params = [{pipeline_mode = #tpu.pipeline_mode<synchronous>, transform_indices = @transform_0, window_bounds = array<i64: 8, 256>}, {transform_indices = @transform_1, window_bounds = array<i64: 8, 256>}, {transform_indices = @transform_2, window_bounds = array<i64: 8, 256>}, {transform_indices = @transform_3, window_bounds = array<i64: 8, 256>}]} {
    %c0 = arith.constant 0 : index
    %c0_0 = arith.constant 0 : index
    %0 = vector.load %arg3[%c0, %c0_0] : memref<8x256xf32, #tpu.memory_space<vmem>>, vector<8x256xf32>
    %c0_1 = arith.constant 0 : index
    %c0_2 = arith.constant 0 : index
    %1 = vector.load %arg2[%c0_1, %c0_2] : memref<8x256xf32, #tpu.memory_space<vmem>>, vector<8x256xf32>
    %c0_3 = arith.constant 0 : index
    %c0_4 = arith.constant 0 : index
    %2 = vector.load %arg1[%c0_3, %c0_4] : memref<8x256xf32, #tpu.memory_space<vmem>>, vector<8x256xf32>
    %c16_i32 = arith.constant 16 : i32
    %3 = tpu.dynamic_rotate %0 by %c16_i32 dim 1 : vector<8x256xf32>, i32 -> vector<8x256xf32>
    %4 = vector.extract_strided_slice %2 {offsets = [0, 0], sizes = [1, 256], strides = [1, 1]} : vector<8x256xf32> to vector<1x256xf32>
    %5 = vector.broadcast %4 : vector<1x256xf32> to vector<8x256xf32>
    %6 = arith.addf %3, %5 : vector<8x256xf32>
    %7 = arith.maximumf %0, %6 : vector<8x256xf32>
    %c240_i32 = arith.constant 240 : i32
    %8 = tpu.dynamic_rotate %0 by %c240_i32 dim 1 : vector<8x256xf32>, i32 -> vector<8x256xf32>
    %9 = vector.extract_strided_slice %2 {offsets = [1, 0], sizes = [1, 256], strides = [1, 1]} : vector<8x256xf32> to vector<1x256xf32>
    %10 = vector.broadcast %9 : vector<1x256xf32> to vector<8x256xf32>
    %11 = arith.addf %8, %10 : vector<8x256xf32>
    %12 = arith.maximumf %7, %11 : vector<8x256xf32>
    %c1_i32 = arith.constant 1 : i32
    %13 = tpu.dynamic_rotate %12 by %c1_i32 dim 1 : vector<8x256xf32>, i32 -> vector<8x256xf32>
    %14 = vector.extract_strided_slice %2 {offsets = [2, 0], sizes = [1, 256], strides = [1, 1]} : vector<8x256xf32> to vector<1x256xf32>
    %15 = vector.broadcast %14 : vector<1x256xf32> to vector<8x256xf32>
    %16 = arith.addf %13, %15 : vector<8x256xf32>
    %17 = arith.maximumf %12, %16 : vector<8x256xf32>
    %c255_i32 = arith.constant 255 : i32
    %18 = tpu.dynamic_rotate %12 by %c255_i32 dim 1 : vector<8x256xf32>, i32 -> vector<8x256xf32>
    %19 = vector.extract_strided_slice %2 {offsets = [3, 0], sizes = [1, 256], strides = [1, 1]} : vector<8x256xf32> to vector<1x256xf32>
    %20 = vector.broadcast %19 : vector<1x256xf32> to vector<8x256xf32>
    %21 = arith.addf %18, %20 : vector<8x256xf32>
    %22 = arith.maximumf %17, %21 : vector<8x256xf32>
    %23 = arith.cmpf oeq, %0, %22 : vector<8x256xf32>
    %cst = arith.constant 0.699999988 : f32
    %24 = vector.broadcast %cst : f32 to vector<8x256xf32>
    %25 = arith.cmpf oge, %0, %24 : vector<8x256xf32>
    %26 = arith.andi %23, %25 : vector<8x256xi1>
    %cst_5 = arith.constant 0.699999988 : f32
    %27 = vector.broadcast %cst_5 : f32 to vector<8x256xf32>
    %28 = arith.cmpf oge, %1, %27 : vector<8x256xf32>
    %29 = arith.andi %26, %28 : vector<8x256xi1>
    %30 = arith.extui %29 : vector<8x256xi1> to vector<8x256xi8>
    %c0_6 = arith.constant 0 : index
    %c0_7 = arith.constant 0 : index
    %31 = vector.load %arg4[%c0_6, %c0_7] : memref<8x256xi8, #tpu.memory_space<vmem>>, vector<8x256xi8>
    tpu.vector_store %arg4[%c0_6, %c0_7], %30 {strides = array<i32>} : memref<8x256xi8, #tpu.memory_space<vmem>>, vector<8x256xi8>,
    return
  }
  func.func @transform_0(%arg0: i32) -> (i32, i32) {
    %c0_i32 = arith.constant 0 : i32
    %c0_i32_0 = arith.constant 0 : i32
    %c0_i32_1 = arith.constant 0 : i32
    return %c0_i32, %c0_i32_0 : i32, i32
  }
  func.func @transform_1(%arg0: i32) -> (i32, i32) {
    %c0_i32 = arith.constant 0 : i32
    %c0_i32_0 = arith.constant 0 : i32
    return %arg0, %c0_i32 : i32, i32
  }
  func.func @transform_2(%arg0: i32) -> (i32, i32) {
    %c0_i32 = arith.constant 0 : i32
    %c0_i32_0 = arith.constant 0 : i32
    return %arg0, %c0_i32 : i32, i32
  }
  func.func @transform_3(%arg0: i32) -> (i32, i32) {
    %c0_i32 = arith.constant 0 : i32
    %c0_i32_0 = arith.constant 0 : i32
    return %arg0, %c0_i32 : i32, i32
  }
}

</mosaic_0001>

<bundles_post_ra>
// kernel: tpu_custom_call.1
= control target key start
LH: loop header
LB: loop body
LE: loop exit
PB: predicated region body
PF: predicated region fallthrough
CT: control target
= control target key end

     0   :  { %8 = vsyncpa [#allocation3], 0  ;;  %s323_s0 = inlined_call_operand.hbm [shape: f32[8,256], index: 0, kind: input, shape index: {}]   ;;  %s324_s1 = inlined_call_operand.hbm [shape: f32[8,256], index: 1, kind: input, shape index: {}]   ;;  %s325_s2 = inlined_call_operand.hbm [shape: f32[8,256], index: 2, kind: input, shape index: {}]   ;;  %s326_s3 = inlined_call_operand.hbm [shape: s8[8,256], index: 3, kind: output, shape index: {}]  }
   0x1   :  { %9 = vsyncpa [#allocation6], 0 }
   0x2   :  { %10 = vsyncpa [#allocation4], 0  ;;  %s268_s12 = smov [#allocation5]   ;;  %s269_s14 = smov [#allocation2]  }
   0x3   :  { %s27_s13 = sshll.u32 %s268_s12, 4  ;;  %s17_s15 = sshll.u32 %s269_s14, 4  ;;  %s28_s13 = int_to_ptr.vmem [resolvable:$true] %s27_s13  ;;  %s18_s15 = int_to_ptr.vmem [resolvable:$true] %s17_s15 }
   0x4   :  { %s190_s16 = scalar_lea.vmem %s28_s13, 256  ;;  %p195_p1 = scmp.lt.s32.totalorder %s28_s13, %s28_s13 }
   0x5   :  { %p191_p0 = scmp.ne.s32.totalorder %s28_s13, %s190_s16  ;;  %p196_p2 = scmp.lt.s32.totalorder %s190_s16, %s190_s16 }
   0x7   :  { %p197_p3 = por %p196_p2, %p195_p1 }
   0x9   :  { %p198_p4 = pnand %p197_p3, %p191_p0 }
   0xb   :  { %201 = shalt.err (!%p198_p4)
}
   0xc   :  { %30 = dma.hbm_to_vmem [thread:$0]  %s324_s1, 256, %s28_s13, [#allocation6]  }
   0xd   :  { %s210_s19 = scalar_lea.vmem %s18_s15, 256  ;;  %p215_p6 = scmp.lt.s32.totalorder %s18_s15, %s18_s15 }
   0xe   :  { %p211_p5 = scmp.ne.s32.totalorder %s18_s15, %s210_s19  ;;  %p216_p7 = scmp.lt.s32.totalorder %s210_s19, %s210_s19 }
  0x10   :  { %p217_p8 = por %p216_p7, %p215_p6 }
  0x12   :  { %p218_p9 = pnand %p217_p8, %p211_p5 }
  0x14   :  { %221 = shalt.err (!%p218_p9)
}
  0x15   :  { %20 = dma.hbm_to_vmem [thread:$0]  %s323_s0, 256, %s18_s15, [#allocation3]  }
  0x16   :  { %s270_s22 = smov [#allocation7]  }
  0x17   :  { %s37_s23 = sshll.u32 %s270_s22, 4  ;;  %s38_s23 = int_to_ptr.vmem [resolvable:$true] %s37_s23 }
  0x18   :  { %s230_s24 = scalar_lea.vmem %s38_s23, 256  ;;  %p235_p11 = scmp.lt.s32.totalorder %s38_s23, %s38_s23 }
  0x19   :  { %p231_p10 = scmp.ne.s32.totalorder %s38_s23, %s230_s24  ;;  %p236_p12 = scmp.lt.s32.totalorder %s230_s24, %s230_s24 }
  0x1b   :  { %p237_p13 = por %p236_p12, %p235_p11 }
  0x1d   :  { %p238_p0 = pnand %p237_p13, %p231_p10 }
  0x1f   :  { %241 = shalt.err (!%p238_p0)
}
  0x20   :  { %40 = dma.hbm_to_vmem [thread:$0]  %s325_s2, 256, %s38_s23, [#allocation6]  }
  0x21   :  { %262 = dma.done.wait [#allocation3], 256  }
  0x22   :  { %263 = vsyncadd [#allocation3], 4294967040 }
  0x23   :  { %264 = dma.done.wait [#allocation6], 512  }
  0x24   :  { %265 = vsyncadd [#allocation6], 4294966784  ;;  %v306_v0 = vld [vmem:[#allocation7] sm:$0xff]  ;;  %s271_s0 = smov 112   ;;  %s272_s26 = smov 16   ;;  %v310_v1 = vld [vmem:[#allocation7 + $0x8] sm:$0xff]  ;;  %v62_v2 = vlaneseq }
  0x25   :  { %79 = vrot.lane.b32.xlu1 %v306_v0, %s271_s0  ;;  %58 = vrot.lane.b32.xlu0 %v306_v0, %s272_s26  ;;  %v56_v6 = vld [vmem:[#allocation2] sm:$0xff]  ;;  %v57_v7 = vld [vmem:[#allocation2 + $0x8] sm:$0xff]  ;;  %s273_s2 = smov 1   ;;  %s274_s27 = smov 127   ;;  %v54_v49 = vld [vmem:[#allocation5] sm:$0xff]  ;;  %v275_v53 = vmov 0  }
  0x26   :  { %v68_v3 = vshrl.u32 %v62_v2, 7  ;;  %v63_v4 = vand.u32 127, %v62_v2  ;;  %vm138_vm4 = vcmp.ge.f32.partialorder %v306_v0, 0.7  ;;  %v55_v52 = vld [vmem:[#allocation5 + $0x8] sm:$0xff]  ;;  %s276_s28 = smov [#allocation8]  }
  0x27   :  { %vm139_vm5 = vcmp.ge.f32.partialorder %v310_v1, 0.7  ;;  %vm142_vm8 = vcmp.ge.f32.partialorder %v54_v49, 0.7  ;;  %vm143_vm10 = vcmp.ge.f32.partialorder %v55_v52, 0.7 }
  0x28   :  { %v69_v5 = vsub.s32 0, %v68_v3  ;;  %v88_v10 = vsub.s32 1, %v68_v3  ;;  %vm83_vm0 = vcmp.lt.s32.totalorder %v63_v4, 112  ;;  %vm64_vm1 = vcmp.lt.s32.totalorder %v63_v4, 16  ;;  %s163_s29 = sshll.u32 %s276_s28, 4  ;;  %s164_s29 = int_to_ptr.vmem [resolvable:$true] %s163_s29 }
  0x29   :  { %81 = vrot.lane.b32.xlu1 %v310_v1, %s271_s0  ;;  %60 = vrot.lane.b32.xlu0 %v310_v1, %s272_s26  ;;  %v107_v29 = vsub.s32 2, %v68_v3  ;;  %vm102_vm2 = vcmp.lt.s32.totalorder %v63_v4, 1  ;;  %v126_v32 = vsub.s32 3, %v68_v3  ;;  %vm121_vm3 = vcmp.lt.s32.totalorder %v63_v4, 127  ;;  %s242_s30 = scalar_lea.vmem %s164_s29, 64  ;;  %p247_p2 = scmp.lt.s32.totalorder %s164_s29, %s164_s29 }
  0x2a   :  { %v70_v11 = vrot.slane %v56_v6, %v69_v5  ;;  %v74_v12 = vrot.slane %v57_v7, %v69_v5  ;;  %v89_v13 = vrot.slane %v56_v6, %v88_v10  ;;  %v93_v14 = vrot.slane %v57_v7, %v88_v10  ;;  %p243_p1 = scmp.ne.s32.totalorder %s164_s29, %s242_s30  ;;  %p248_p3 = scmp.lt.s32.totalorder %s242_s30, %s242_s30 }
  0x2b   :  { %v108_v30 = vrot.slane %v56_v6, %v107_v29  ;;  %v112_v31 = vrot.slane %v57_v7, %v107_v29  ;;  %v127_v39 = vrot.slane %v56_v6, %v126_v32  ;;  %v131_v40 = vrot.slane %v57_v7, %v126_v32 }
  0x2c   :  { %p249_p4 = por %p248_p3, %p247_p2 }
  0x2e   :  { %p250_p5 = pnand %p249_p4, %p243_p1 }
  0x97   :  { %v80_v8 = vpop.permute.xlu1 %79  ;;  %v59_v9 = vpop.permute.xlu0 %58 }
  0x9b   :  { %v82_v15 = vpop.permute.xlu1 %81  ;;  %v61_v16 = vpop.permute.xlu0 %60 }
  0x9c   :  { %v84_v17 = vsel %vm83_vm0, %v80_v8, %v82_v15  ;;  %v85_v18 = vsel %vm83_vm0, %v82_v15, %v80_v8  ;;  %v65_v19 = vsel %vm64_vm1, %v59_v9, %v61_v16  ;;  %v66_v20 = vsel %vm64_vm1, %v61_v16, %v59_v9 }
  0x9d   :  { %v75_v21 = vadd.f32 %v70_v11, %v66_v20  ;;  %v76_v22 = vadd.f32 %v74_v12, %v65_v19  ;;  %v94_v23 = vadd.f32 %v89_v13, %v84_v17  ;;  %v95_v24 = vadd.f32 %v93_v14, %v85_v18 }
  0x9f   :  { %v77_v25 = vmax.f32 %v306_v0, %v75_v21  ;;  %v78_v26 = vmax.f32 %v310_v1, %v76_v22 }
  0xa1   :  { %v96_v27 = vmax.f32 %v77_v25, %v94_v23  ;;  %v97_v28 = vmax.f32 %v78_v26, %v95_v24 }
  0xa3   :  { %98 = vrot.lane.b32.xlu0 %v96_v27, %s273_s2  ;;  %100 = vrot.lane.b32.xlu1 %v97_v28, %s273_s2 }
  0xa7   :  { %117 = vrot.lane.b32.xlu0 %v96_v27, %s274_s27  ;;  %119 = vrot.lane.b32.xlu1 %v97_v28, %s274_s27 }
 0x115   :  { %v99_v33 = vpop.permute.xlu0 %98  ;;  %v101_v34 = vpop.permute.xlu1 %100 }
 0x116   :  { %v103_v35 = vsel %vm102_vm2, %v99_v33, %v101_v34  ;;  %v104_v36 = vsel %vm102_vm2, %v101_v34, %v99_v33 }
 0x117   :  { %v113_v37 = vadd.f32 %v108_v30, %v104_v36  ;;  %v114_v38 = vadd.f32 %v112_v31, %v103_v35 }
 0x119   :  { %v118_v41 = vpop.permute.xlu0 %117  ;;  %v120_v42 = vpop.permute.xlu1 %119  ;;  %v115_v45 = vmax.f32 %v96_v27, %v113_v37  ;;  %v116_v46 = vmax.f32 %v97_v28, %v114_v38 }
 0x11a   :  { %v122_v43 = vsel %vm121_vm3, %v118_v41, %v120_v42  ;;  %v123_v44 = vsel %vm121_vm3, %v120_v42, %v118_v41 }
 0x11b   :  { %v132_v47 = vadd.f32 %v127_v39, %v122_v43  ;;  %v133_v48 = vadd.f32 %v131_v40, %v123_v44 }
 0x11d   :  { %v134_v50 = vmax.f32 %v115_v45, %v132_v47  ;;  %v135_v51 = vmax.f32 %v116_v46, %v133_v48 }
 0x11f   :  { %vm136_vm6 = vcmp.eq.f32.partialorder %v306_v0, %v134_v50  ;;  %vm137_vm7 = vcmp.eq.f32.partialorder %v310_v1, %v135_v51 }
 0x120   :  { %vm140_vm9 = vmand %vm136_vm6, %vm138_vm4 }
 0x121   :  { %vm141_vm11 = vmand %vm137_vm7, %vm139_vm5 }
 0x122   :  { %vm144_vm12 = vmand %vm140_vm9, %vm142_vm8 }
 0x123   :  { %vm145_vm13 = vmand %vm141_vm11, %vm143_vm10 }
 0x124   :  { %vm146_vm14 = vmpackc.low %vm144_vm12, %vm144_vm12 }
 0x125   :  { %vm147_vm15 = vmpackc.even %vm146_vm14, %vm146_vm14 }
 0x126   :  { %vm148_vm0 = vmpackc.low %vm145_vm13, %vm145_vm13  ;;  %v150_v54 = vsel %vm147_vm15, 16843009, %v275_v53 }
 0x127   :  { %vm149_vm1 = vmpackc.even %vm148_vm0, %vm148_vm0  ;;  %v152_v55 = vunpack.c.0.s8 %v150_v54 }
 0x128   :  { %v151_v56 = vsel %vm149_vm1, 16843009, %v275_v53 }
 0x129   :  { %v153_v57 = vunpack.c.0.s8 %v151_v56 }
 0x12b   :  { %v154_v58 = vpack.c.b16 %v153_v57, %v152_v55 }
 0x12d   :  { %v155_v59 = vpack.c.b8 %v154_v58, %v154_v58 }
 0x12f   :  { %156 = vst [vmem:[#allocation8] sm:$0xf] %v155_v59 }
 0x130   :  { %253 = shalt.err (!%p250_p5)
}
 0x131   :  { %166 = dma.vmem_to_hbm [thread:$0]  %s164_s29, 64, %s326_s3, [#allocation4]  }
 0x132   :  { %266 = dma.done.wait [#allocation4], 64  }
 0x133   :  { %267 = vsyncadd [#allocation4], 4294967232 }
 0x134   :  { %170 = vsyncpa [#allocation3], 1 }
 0x135   :  { %171 = vsyncpa [#allocation6], 1 }
 0x136   :  { %172 = vsyncpa [#allocation4], 1 }

</bundles_post_ra>
